<compile_context>
chip_gen: v7x
topology: tpu7x:2x2x1
jax: 0.10.0
libtpu: 0.0.40
codegen_flags: <defaults>
</compile_context>

<pallas_src>
import functools
import math

import jax
import jax.numpy as jnp
from jax import lax
from jax.experimental import pallas as pl
from jax.experimental.pallas import tpu as pltpu


def _mha_kernel(x_ref, w_ref, o_ref, *, num_head, head_dim, compute_dtype,
                approx_recip):
    # x_ref: (B_blk, T, E) compute_dtype
    # w_ref: (E, 3E) = [Wq^T / sqrt(D) | Wk^T | Wv^T] compute_dtype
    # o_ref: (B_blk, T, E) output dtype
    Bb, T, E = x_ref.shape

    # Fused QKV projection: one (Bb*T, E) x (E, 3E) MXU matmul, f32 accumulation.
    x2d = x_ref[...].reshape(Bb * T, E)
    qkv = jnp.dot(x2d, w_ref[...], preferred_element_type=jnp.float32)   # (Bb*T, 3E)
    # Single cast back to the MXU operand dtype, then a leading-dim-only reshape.
    qkv = qkv.astype(compute_dtype).reshape(Bb, T, 3 * E)

    for h in range(num_head):                     # H is small & static -> unrolled
        lo = h * head_dim
        qh = qkv[:, :, lo:lo + head_dim]                      # (Bb,T,D), scale pre-folded
        kh = qkv[:, :, E + lo:E + lo + head_dim]              # (Bb,T,D)
        vh = qkv[:, :, 2 * E + lo:2 * E + lo + head_dim]      # (Bb,T,D)

        # q k^T: contract trailing D of both operands, batched over Bb
        # (no materialized k transpose).
        s = lax.dot_general(qh, kh, (((2,), (2,)), ((0,), (0,))),
                            preferred_element_type=jnp.float32)           # (Bb,T,T)

        # Numerically-stable softmax over keys, in f32.
        s = s - jnp.max(s, axis=-1, keepdims=True)
        p = jnp.exp(s)
        p = p * pl.reciprocal(jnp.sum(p, axis=-1, keepdims=True),
                              approx=approx_recip)
        # TODO(synk): nn.Dropout(prob) not applied -- eval/inference identity.

        oh = lax.dot_general(p.astype(compute_dtype), vh,
                             (((2,), (1,)), ((0,), (0,))),
                             preferred_element_type=jnp.float32)          # (Bb,T,D)

        # Stream this head's result straight into its lane slot of the output
        # block: no head_outs list, no sub-128-lane concatenate.
        o_ref[:, :, lo:lo + head_dim] = oh.astype(o_ref.dtype)


def _vmem_capacity_bytes():
    """Per-core VMEM capacity; conservative 64 MiB (v7x) fallback."""
    try:
        return int(pltpu.get_tpu_info().vmem_capacity_bytes)
    except Exception:
        return 64 * 1024 * 1024


def _vmem_bytes_estimate(b_blk, T, E, num_head, in_item, out_item, comp_item):
    """Rough per-step VMEM footprint (pipeline buffers + live kernel values)."""
    rows = b_blk * T
    D = E // num_head
    return (2 * E * 3 * E * comp_item           # fused weight (double-buffered)
            + 2 * rows * E * in_item            # x blocks (double-buffered)
            + 2 * rows * E * out_item           # out blocks (double-buffered)
            + rows * 3 * E * (4 + comp_item)    # qkv f32 + compute-dtype copy
            + 2 * b_blk * T * T * 4             # score + prob f32 tiles (one head)
            + 3 * rows * D * comp_item          # q/k/v slices for the live head
            + rows * D * 4)                     # current head output (f32)


def _pick_batch_block(N, T, E, num_head, in_item, out_item, comp_item,
                      vmem_budget, target_rows=512):
    """Largest divisor of N fitting the ~512-row target and VMEM budget; keeps
    >= 2 grid steps (pipelining) and prefers an even step count (v7x 2 TCs)."""
    best, best_even = 1, None
    for b in range(1, N + 1):
        if N % b:
            continue
        if b > 1 and b * T > target_rows:
            break
        if N >= 2 and N // b < 2:
            break
        if b > 1 and _vmem_bytes_estimate(b, T, E, num_head, in_item, out_item,
                                          comp_item) > vmem_budget:
            break
        best = b
        if (N // b) % 2 == 0:
            best_even = b
    if best_even is not None and 2 * best_even >= best:
        return best_even
    return best


def multi_head_attention(x, wq, wk, wv, num_head, *,
                         compute_dtype=jnp.bfloat16, batch_block=None):
    """x: (N, T, E); wq/wk/wv: (E, E) nn.Linear weights (out_features, in_features)."""
    N, T, E = x.shape
    assert E % num_head == 0, "token_dim is not divisible with num_head"
    D = E // num_head

    comp = jnp.dtype(compute_dtype)
    out_dtype = x.dtype

    # nn.Linear computes x @ W^T; fuse the three transposed weights into (E, 3E)
    # and fold the 1/sqrt(D) attention scale into the Q columns (zero kernel cost).
    w_qkv = jnp.concatenate([wq.T * (1.0 / math.sqrt(D)), wk.T, wv.T],
                            axis=1).astype(comp)
    # Narrow the DMA'd activations in the wrapper; accumulation stays f32 in-kernel.
    x_in = x.astype(comp)

    vmem_cap = _vmem_capacity_bytes()
    if batch_block is None:
        B_blk = _pick_batch_block(N, T, E, num_head, comp.itemsize,
                                  jnp.dtype(out_dtype).itemsize, comp.itemsize,
                                  vmem_budget=int(0.6 * vmem_cap))
    else:
        B_blk = batch_block
    assert N % B_blk == 0
    grid = (N // B_blk,)

    # Raise the scoped VMEM limit when needed: threshold at v5e's 16 MiB scoped
    # default (the smallest across generations), clamp to detected capacity.
    est_bytes = int(1.25 * _vmem_bytes_estimate(        # x1.25: relayout/copy slack
        B_blk, T, E, num_head, comp.itemsize, jnp.dtype(out_dtype).itemsize,
        comp.itemsize))
    vmem_limit = None
    if est_bytes > 16 * 1024 * 1024:
        vmem_limit = min(est_bytes, vmem_cap)

    kernel = functools.partial(_mha_kernel, num_head=num_head, head_dim=D,
                               compute_dtype=comp,
                               approx_recip=comp.itemsize < 4)

    return pl.pallas_call(
        kernel,
        out_shape=jax.ShapeDtypeStruct((N, T, E), out_dtype),
        grid_spec=pltpu.PrefetchScalarGridSpec(
            num_scalar_prefetch=0,
            grid=grid,
            in_specs=[
                pl.BlockSpec((B_blk, T, E), lambda n: (n, 0, 0)),
                pl.BlockSpec((E, 3 * E), lambda n: (0, 0)),
            ],
            out_specs=pl.BlockSpec((B_blk, T, E), lambda n: (n, 0, 0)),
        ),
        compiler_params=pltpu.CompilerParams(
            dimension_semantics=("parallel",),
            vmem_limit_bytes=vmem_limit),
    )(x_in, w_qkv)


def _reference(x, wq, wk, wv, num_head):
    """Pure-JAX mirror of the PyTorch forward (eval mode), for checking."""
    N, T, E = x.shape
    D = E // num_head
    q = x @ wq.T
    k = x @ wk.T
    v = x @ wv.T
    q = q.reshape(N, T, num_head, D).transpose(0, 2, 1, 3)        # N H T D
    k = k.reshape(N, T, num_head, D).transpose(0, 2, 3, 1)        # N H D T
    v = v.reshape(N, T, num_head, D).transpose(0, 2, 1, 3)        # N H T D
    score = jnp.matmul(q, k) / math.sqrt(D)
    prob = jax.nn.softmax(score, axis=3)
    wsum = jnp.matmul(prob, v)                                    # N H T D
    return wsum.transpose(0, 2, 1, 3).reshape(N, T, E)            # N T (H D)


if __name__ == "__main__":
    # Module config consistent with the forward: num_token=T, token_dim=E, num_head=H.
    # (Toy shape; real ViT widths with E a multiple of 128 are lane-dense.)
    T, E, H = 8, 32, 4
    key = jax.random.PRNGKey(0)
    kx, kq, kk, kv, kx2 = jax.random.split(key, 5)

    bound = 1.0 / math.sqrt(E)
    wq = jax.random.uniform(kq, (E, E), jnp.float32, -bound, bound)
    wk = jax.random.uniform(kk, (E, E), jnp.float32, -bound, bound)
    wv = jax.random.uniform(kv, (E, E), jnp.float32, -bound, bound)

    # 1) f32 compute path, tight check (B_blk = 1, grid = 2 "parallel" steps).
    x = jax.random.normal(kx, (2, T, E), dtype=jnp.float32)
    out = jax.block_until_ready(
        multi_head_attention(x, wq, wk, wv, H, compute_dtype=jnp.float32))
    ref = _reference(x, wq, wk, wv, H)
    assert out.shape == x.shape
    assert jnp.allclose(out, ref, rtol=1e-4, atol=1e-4), "f32 mismatch (N=2)"

    # 2) Larger batch exercising multi-row blocks (B_blk = 4, grid = 2), f32.
    x8 = jax.random.normal(kx2, (8, T, E), dtype=jnp.float32)
    out8 = jax.block_until_ready(
        multi_head_attention(x8, wq, wk, wv, H, compute_dtype=jnp.float32))
    ref8 = _reference(x8, wq, wk, wv, H)
    assert jnp.allclose(out8, ref8, rtol=1e-4, atol=1e-4), "f32 mismatch (N=8)"

    # 3) Default path: bf16 MXU operands + approx softmax reciprocal
    #    (f32 accumulation / softmax stats; output stored in x's dtype).
    outb = jax.block_until_ready(multi_head_attention(x, wq, wk, wv, H))
    assert jnp.allclose(outb, ref, rtol=5e-2, atol=5e-2), "bf16 mismatch"

    print("KERNEL_OK")
</pallas_src>

<mosaic_0001>
module attributes {stable_mosaic.version = 11 : i64} {
  func.func @_mha_kernel(%arg0: i32, %arg1: memref<1x8x32xf32, #tpu.memory_space<vmem>>, %arg2: memref<32x96xf32, #tpu.memory_space<vmem>>, %arg3: memref<1x8x32xf32, #tpu.memory_space<vmem>>) attributes {dimension_semantics = [#tpu.dimension_semantics<parallel>], iteration_bounds = array<i64: 2>, scalar_prefetch = 0 : i64, scratch_operands = 0 : i64, tpu.core_type = #tpu.core_type<tc>, window_params = [{transform_indices = @transform_0, window_bounds = array<i64: 1, 8, 32>}, {pipeline_mode = #tpu.pipeline_mode<synchronous>, transform_indices = @transform_1, window_bounds = array<i64: 32, 96>}, {transform_indices = @transform_2, window_bounds = array<i64: 1, 8, 32>}]} {
    %c0 = arith.constant 0 : index
    %c0_0 = arith.constant 0 : index
    %c0_1 = arith.constant 0 : index
    %0 = vector.load %arg1[%c0, %c0_0, %c0_1] : memref<1x8x32xf32, #tpu.memory_space<vmem>>, vector<1x8x32xf32>
    %1 = vector.shape_cast %0 : vector<1x8x32xf32> to vector<8x32xf32>
    %c0_2 = arith.constant 0 : index
    %c0_3 = arith.constant 0 : index
    %2 = vector.load %arg2[%c0_2, %c0_3] : memref<32x96xf32, #tpu.memory_space<vmem>>, vector<32x96xf32>
    %cst = arith.constant dense<0.000000e+00> : vector<8x96xf32>
    %3 = tpu.matmul %1, %2, %cst {dimension_numbers = #tpu.dot_dimension_numbers<[1], [0], [0], [1], [0, 0, 1, 1], [], []>} : vector<8x32xf32>, vector<32x96xf32>, vector<8x96xf32> -> vector<8x96xf32>
    %4 = vector.shape_cast %3 : vector<8x96xf32> to vector<1x8x96xf32>
    %5 = vector.extract_strided_slice %4 {offsets = [0, 0, 0], sizes = [1, 8, 8], strides = [1, 1, 1]} : vector<1x8x96xf32> to vector<1x8x8xf32>
    %6 = vector.extract_strided_slice %4 {offsets = [0, 0, 32], sizes = [1, 8, 8], strides = [1, 1, 1]} : vector<1x8x96xf32> to vector<1x8x8xf32>
    %7 = vector.extract_strided_slice %4 {offsets = [0, 0, 64], sizes = [1, 8, 8], strides = [1, 1, 1]} : vector<1x8x96xf32> to vector<1x8x8xf32>
    %cst_4 = arith.constant dense<0.000000e+00> : vector<1x8x8xf32>
    %8 = tpu.matmul %5, %6, %cst_4 {dimension_numbers = #tpu.dot_dimension_numbers<[2], [2], [1], [1], [0, 0, 0, 1, 1, 1], [0], [0]>} : vector<1x8x8xf32>, vector<1x8x8xf32>, vector<1x8x8xf32> -> vector<1x8x8xf32>
    %cst_5 = arith.constant dense<0xFF800000> : vector<1x8xf32>
    %9 = vector.multi_reduction <maximumf>, %8, %cst_5 [2] : vector<1x8x8xf32> to vector<1x8xf32>
    %10 = vector.shape_cast %9 : vector<1x8xf32> to vector<1x8x1xf32>
    %11 = vector.broadcast %10 : vector<1x8x1xf32> to vector<1x8x8xf32>
    %12 = arith.subf %8, %11 : vector<1x8x8xf32>
    %13 = math.exp %12 : vector<1x8x8xf32>
    %cst_6 = arith.constant dense<0.000000e+00> : vector<1x8xf32>
    %14 = vector.multi_reduction <add>, %13, %cst_6 [2] : vector<1x8x8xf32> to vector<1x8xf32>
    %15 = vector.shape_cast %14 : vector<1x8xf32> to vector<1x8x1xf32>
    %16 = tpu.reciprocal %15 : vector<1x8x1xf32> -> vector<1x8x1xf32>
    %17 = vector.broadcast %16 : vector<1x8x1xf32> to vector<1x8x8xf32>
    %18 = arith.mulf %13, %17 : vector<1x8x8xf32>
    %cst_7 = arith.constant dense<0.000000e+00> : vector<1x8x8xf32>
    %19 = tpu.matmul %18, %7, %cst_7 {dimension_numbers = #tpu.dot_dimension_numbers<[2], [1], [1], [2], [0, 0, 0, 1, 1, 2], [0], [0]>} : vector<1x8x8xf32>, vector<1x8x8xf32>, vector<1x8x8xf32> -> vector<1x8x8xf32>
    %c0_8 = arith.constant 0 : index
    %c0_9 = arith.constant 0 : index
    %c0_10 = arith.constant 0 : index
    %20 = vector.load %arg3[%c0_8, %c0_9, %c0_10] : memref<1x8x32xf32, #tpu.memory_space<vmem>>, vector<1x8x8xf32>
    tpu.vector_store %arg3[%c0_8, %c0_9, %c0_10], %19 {strides = array<i32>} : memref<1x8x32xf32, #tpu.memory_space<vmem>>, vector<1x8x8xf32>,
    %21 = vector.extract_strided_slice %4 {offsets = [0, 0, 8], sizes = [1, 8, 8], strides = [1, 1, 1]} : vector<1x8x96xf32> to vector<1x8x8xf32>
    %22 = vector.extract_strided_slice %4 {offsets = [0, 0, 40], sizes = [1, 8, 8], strides = [1, 1, 1]} : vector<1x8x96xf32> to vector<1x8x8xf32>
    %23 = vector.extract_strided_slice %4 {offsets = [0, 0, 72], sizes = [1, 8, 8], strides = [1, 1, 1]} : vector<1x8x96xf32> to vector<1x8x8xf32>
    %cst_11 = arith.constant dense<0.000000e+00> : vector<1x8x8xf32>
    %24 = tpu.matmul %21, %22, %cst_11 {dimension_numbers = #tpu.dot_dimension_numbers<[2], [2], [1], [1], [0, 0, 0, 1, 1, 1], [0], [0]>} : vector<1x8x8xf32>, vector<1x8x8xf32>, vector<1x8x8xf32> -> vector<1x8x8xf32>
    %cst_12 = arith.constant dense<0xFF800000> : vector<1x8xf32>
    %25 = vector.multi_reduction <maximumf>, %24, %cst_12 [2] : vector<1x8x8xf32> to vector<1x8xf32>
    %26 = vector.shape_cast %25 : vector<1x8xf32> to vector<1x8x1xf32>
    %27 = vector.broadcast %26 : vector<1x8x1xf32> to vector<1x8x8xf32>
    %28 = arith.subf %24, %27 : vector<1x8x8xf32>
    %29 = math.exp %28 : vector<1x8x8xf32>
    %cst_13 = arith.constant dense<0.000000e+00> : vector<1x8xf32>
    %30 = vector.multi_reduction <add>, %29, %cst_13 [2] : vector<1x8x8xf32> to vector<1x8xf32>
    %31 = vector.shape_cast %30 : vector<1x8xf32> to vector<1x8x1xf32>
    %32 = tpu.reciprocal %31 : vector<1x8x1xf32> -> vector<1x8x1xf32>
    %33 = vector.broadcast %32 : vector<1x8x1xf32> to vector<1x8x8xf32>
    %34 = arith.mulf %29, %33 : vector<1x8x8xf32>
    %cst_14 = arith.constant dense<0.000000e+00> : vector<1x8x8xf32>
    %35 = tpu.matmul %34, %23, %cst_14 {dimension_numbers = #tpu.dot_dimension_numbers<[2], [1], [1], [2], [0, 0, 0, 1, 1, 2], [0], [0]>} : vector<1x8x8xf32>, vector<1x8x8xf32>, vector<1x8x8xf32> -> vector<1x8x8xf32>
    %c0_15 = arith.constant 0 : index
    %c0_16 = arith.constant 0 : index
    %c8 = arith.constant 8 : index
    %36 = vector.load %arg3[%c0_15, %c0_16, %c8] : memref<1x8x32xf32, #tpu.memory_space<vmem>>, vector<1x8x8xf32>
    tpu.vector_store %arg3[%c0_15, %c0_16, %c8], %35 {strides = array<i32>} : memref<1x8x32xf32, #tpu.memory_space<vmem>>, vector<1x8x8xf32>,
    %37 = vector.extract_strided_slice %4 {offsets = [0, 0, 16], sizes = [1, 8, 8], strides = [1, 1, 1]} : vector<1x8x96xf32> to vector<1x8x8xf32>
    %38 = vector.extract_strided_slice %4 {offsets = [0, 0, 48], sizes = [1, 8, 8], strides = [1, 1, 1]} : vector<1x8x96xf32> to vector<1x8x8xf32>
    %39 = vector.extract_strided_slice %4 {offsets = [0, 0, 80], sizes = [1, 8, 8], strides = [1, 1, 1]} : vector<1x8x96xf32> to vector<1x8x8xf32>
    %cst_17 = arith.constant dense<0.000000e+00> : vector<1x8x8xf32>
    %40 = tpu.matmul %37, %38, %cst_17 {dimension_numbers = #tpu.dot_dimension_numbers<[2], [2], [1], [1], [0, 0, 0, 1, 1, 1], [0], [0]>} : vector<1x8x8xf32>, vector<1x8x8xf32>, vector<1x8x8xf32> -> vector<1x8x8xf32>
    %cst_18 = arith.constant dense<0xFF800000> : vector<1x8xf32>
    %41 = vector.multi_reduction <maximumf>, %40, %cst_18 [2] : vector<1x8x8xf32> to vector<1x8xf32>
    %42 = vector.shape_cast %41 : vector<1x8xf32> to vector<1x8x1xf32>
    %43 = vector.broadcast %42 : vector<1x8x1xf32> to vector<1x8x8xf32>
    %44 = arith.subf %40, %43 : vector<1x8x8xf32>
    %45 = math.exp %44 : vector<1x8x8xf32>
    %cst_19 = arith.constant dense<0.000000e+00> : vector<1x8xf32>
    %46 = vector.multi_reduction <add>, %45, %cst_19 [2] : vector<1x8x8xf32> to vector<1x8xf32>
    %47 = vector.shape_cast %46 : vector<1x8xf32> to vector<1x8x1xf32>
    %48 = tpu.reciprocal %47 : vector<1x8x1xf32> -> vector<1x8x1xf32>
    %49 = vector.broadcast %48 : vector<1x8x1xf32> to vector<1x8x8xf32>
    %50 = arith.mulf %45, %49 : vector<1x8x8xf32>
    %cst_20 = arith.constant dense<0.000000e+00> : vector<1x8x8xf32>
    %51 = tpu.matmul %50, %39, %cst_20 {dimension_numbers = #tpu.dot_dimension_numbers<[2], [1], [1], [2], [0, 0, 0, 1, 1, 2], [0], [0]>} : vector<1x8x8xf32>, vector<1x8x8xf32>, vector<1x8x8xf32> -> vector<1x8x8xf32>
    %c0_21 = arith.constant 0 : index
    %c0_22 = arith.constant 0 : index
    %c16 = arith.constant 16 : index
    %52 = vector.load %arg3[%c0_21, %c0_22, %c16] : memref<1x8x32xf32, #tpu.memory_space<vmem>>, vector<1x8x8xf32>
    tpu.vector_store %arg3[%c0_21, %c0_22, %c16], %51 {strides = array<i32>} : memref<1x8x32xf32, #tpu.memory_space<vmem>>, vector<1x8x8xf32>,
    %53 = vector.extract_strided_slice %4 {offsets = [0, 0, 24], sizes = [1, 8, 8], strides = [1, 1, 1]} : vector<1x8x96xf32> to vector<1x8x8xf32>
    %54 = vector.extract_strided_slice %4 {offsets = [0, 0, 56], sizes = [1, 8, 8], strides = [1, 1, 1]} : vector<1x8x96xf32> to vector<1x8x8xf32>
    %55 = vector.extract_strided_slice %4 {offsets = [0, 0, 88], sizes = [1, 8, 8], strides = [1, 1, 1]} : vector<1x8x96xf32> to vector<1x8x8xf32>
    %cst_23 = arith.constant dense<0.000000e+00> : vector<1x8x8xf32>
    %56 = tpu.matmul %53, %54, %cst_23 {dimension_numbers = #tpu.dot_dimension_numbers<[2], [2], [1], [1], [0, 0, 0, 1, 1, 1], [0], [0]>} : vector<1x8x8xf32>, vector<1x8x8xf32>, vector<1x8x8xf32> -> vector<1x8x8xf32>
    %cst_24 = arith.constant dense<0xFF800000> : vector<1x8xf32>
    %57 = vector.multi_reduction <maximumf>, %56, %cst_24 [2] : vector<1x8x8xf32> to vector<1x8xf32>
    %58 = vector.shape_cast %57 : vector<1x8xf32> to vector<1x8x1xf32>
    %59 = vector.broadcast %58 : vector<1x8x1xf32> to vector<1x8x8xf32>
    %60 = arith.subf %56, %59 : vector<1x8x8xf32>
    %61 = math.exp %60 : vector<1x8x8xf32>
    %cst_25 = arith.constant dense<0.000000e+00> : vector<1x8xf32>
    %62 = vector.multi_reduction <add>, %61, %cst_25 [2] : vector<1x8x8xf32> to vector<1x8xf32>
    %63 = vector.shape_cast %62 : vector<1x8xf32> to vector<1x8x1xf32>
    %64 = tpu.reciprocal %63 : vector<1x8x1xf32> -> vector<1x8x1xf32>
    %65 = vector.broadcast %64 : vector<1x8x1xf32> to vector<1x8x8xf32>
    %66 = arith.mulf %61, %65 : vector<1x8x8xf32>
    %cst_26 = arith.constant dense<0.000000e+00> : vector<1x8x8xf32>
    %67 = tpu.matmul %66, %55, %cst_26 {dimension_numbers = #tpu.dot_dimension_numbers<[2], [1], [1], [2], [0, 0, 0, 1, 1, 2], [0], [0]>} : vector<1x8x8xf32>, vector<1x8x8xf32>, vector<1x8x8xf32> -> vector<1x8x8xf32>
    %c0_27 = arith.constant 0 : index
    %c0_28 = arith.constant 0 : index
    %c24 = arith.constant 24 : index
    %68 = vector.load %arg3[%c0_27, %c0_28, %c24] : memref<1x8x32xf32, #tpu.memory_space<vmem>>, vector<1x8x8xf32>
    tpu.vector_store %arg3[%c0_27, %c0_28, %c24], %67 {strides = array<i32>} : memref<1x8x32xf32, #tpu.memory_space<vmem>>, vector<1x8x8xf32>,
    return
  }
  func.func @transform_0(%arg0: i32) -> (i32, i32, i32) {
    %c0_i32 = arith.constant 0 : i32
    %c0_i32_0 = arith.constant 0 : i32
    %c0_i32_1 = arith.constant 0 : i32
    return %arg0, %c0_i32, %c0_i32_0 : i32, i32, i32
  }
  func.func @transform_1(%arg0: i32) -> (i32, i32) {
    %c0_i32 = arith.constant 0 : i32
    %c0_i32_0 = arith.constant 0 : i32
    %c0_i32_1 = arith.constant 0 : i32
    return %c0_i32, %c0_i32_0 : i32, i32
  }
  func.func @transform_2(%arg0: i32) -> (i32, i32, i32) {
    %c0_i32 = arith.constant 0 : i32
    %c0_i32_0 = arith.constant 0 : i32
    %c0_i32_1 = arith.constant 0 : i32
    return %arg0, %c0_i32, %c0_i32_0 : i32, i32, i32
  }
}

</mosaic_0001>

<bundles_post_ra>
// kernel: tpu_custom_call.1
= control target key start
LH: loop header
LB: loop body
LE: loop exit
PB: predicated region body
PF: predicated region fallthrough
CT: control target
= control target key end

     0   :  { %7 = vsyncpa [#allocation3], 0  ;;  %s1651_s0 = inlined_call_operand.hbm [shape: f32[2,8,32], index: 0, kind: input, shape index: {}]   ;;  %s1652_s1 = inlined_call_operand.hbm [shape: f32[32,96], index: 1, kind: input, shape index: {}]   ;;  %s1653_s2 = inlined_call_operand.hbm [shape: f32[2,8,32], index: 2, kind: output, shape index: {}]  }
   0x1   :  { %9 = vsyncpa [#allocation3 + $0x1], 0 }
   0x2   :  { %10 = vsyncpa [#allocation6], 0 }
   0x3   :  { %11 = vsyncpa [#allocation4], 0 }
   0x4   :  { %13 = vsyncpa [#allocation4 + $0x1], 0  ;;  %s1390_s9 = smov 0   ;;  %s1392_s10 = smov 0  }
   0x5   :  { %s1394_s11 = smov 0   ;;  %s1396_s12 = smov 0  }
   0x6 LB: > { %s1411_s13 = sadd.s32 4294967295, %s1351_s12   ;;  %s1026_s14 = sadd.s32 4294967294, %s1351_s12   ;;  %s1351_s12 = sphi %s1396_s12, %s1673_s12   ;;  %s1347_s11 = sphi %s1394_s11, %s1672_s11   ;;  %s1343_s10 = sphi %s1392_s10, %s1671_s10   ;;  %s1339_s9 = sphi %s1390_s9, %s1670_s9  }
   0x7   : > { %p39_p0 = scmp.ne.s32.totalorder %s1343_s10, %s1339_s9  ;;  %p1654_p1 = scmp.eq.s32.totalorder %s1411_s13, 0 }
   0x8   : > { %p90_p3 = scmp.eq.s32.totalorder %s1026_s14, 1  ;;  %p1027_p5 = scmp.ge.s32.totalorder %s1351_s12, 1 }
   0x9   : > { %p1420_p4 = por %p1654_p1, %p39_p0  ;;  %p97_p7 = scmp.lt.s32.totalorder %s1351_s12, 3 }
   0xa   : > { %p1425_p6 = por %p90_p3, %p39_p0  ;;  %s1353_s18 = smov [#allocation5]  }
   0xb   : > { %s1657_s15 = scalar_select %p1420_p4, 1, 0 }
   0xc   : > { %s1658_s16 = scalar_select %p1425_p6, 1, 0 }
   0xd   : > { %p1430_p8 = pnand %p1027_p5, %p97_p7  ;;  %s109_s19 = sshll.u32 %s1353_s18, 4  ;;  %s1434_s19 = int_to_ptr.vmem [resolvable:$true] %s109_s19 }
   0xe   : > { %s1446_s21 = sadd.s32 1, %s1351_s12   ;;  %s26_s22 = sadd.s32 1, %s1347_s11 }
   0xf   : > { %s1659_s17 = scalar_select %p1430_p8, 1, 0 }
  0x10   : > { %p1139_p9 = pneg %p1430_p8  ;;  %s23_s23 = ssub.s32 %s1351_s12, %s1446_s21 }
  0x11   : > { %s1223_s26 = scalar_lea.hbm %s1652_s1, 512 }
  0x12   : > { %p1441_p11 = pnand %p1139_p9, %p1654_p1  ;;  %p1224_p12 = scmp.ne.s32.totalorder %s1652_s1, %s1223_s26 }
  0x13   : > { %p1230_p5 = scmp.lt.u32.totalorder %s1223_s26, %s1652_s1 }
  0x14   : > { %p1225_p13 = pneg %p1441_p11 }
  0x16   : > { %p1226_p0 = pnand %p1225_p13, %p1224_p12 }
  0x18   : > { %p1227_p3 = pneg %p1226_p0 }
  0x1a   : > { %p1232_p7 = pnand %p1230_p5, %p1227_p3 }
  0x1c   : > { %1235 = shalt.err (!%p1232_p7)
}
  0x1d   : > { %s1236_s3 = scalar_lea.vmem %s1434_s19, 512  ;;  %p1244_p2 = scmp.lt.s32.totalorder %s1434_s19, %s1434_s19 }
  0x1e   : > { %p1237_p9 = scmp.ne.s32.totalorder %s1434_s19, %s1236_s3  ;;  %p1245_p6 = scmp.lt.s32.totalorder %s1236_s3, %s1236_s3 }
  0x20   : > { %p1239_p10 = pnand %p1237_p9, %p1225_p13  ;;  %p1246_p4 = por %p1245_p6, %p1244_p2 }
  0x22   : > { %p1240_p1 = pneg %p1239_p10 }
  0x24   : > { %p1247_p8 = pnand %p1246_p4, %p1240_p1 }
  0x26   : > { %1250 = shalt.err (!%p1247_p8)
}
  0x27   : > { %s1354_s4 = smov 128   ;;  %s1355_s5 = smov 8  }
  0x28   : > { %1142 = dma.hbm_to_vmem [thread:$0]  (!%p1441_p11), %s1652_s1, 512, %s1434_s19, [#allocation6], %s1354_s4, %s1354_s4, %s1355_s5  }
  0x29   : > { %p24_p2 = scmp.eq.s32.totalorder %s23_s23, 0  ;;  %p33_p1 = scmp.ne.s32.totalorder %s1347_s11, %s1343_s10 }
  0x2a   : > { %p34_p4 = scmp.eq.s32.totalorder %s1351_s12, 0  ;;  %p1152_p6 = scmp.lt.s32.totalorder %s1351_s12, 2 }
  0x2b   : > { %s1477_s8 = scalar_select %p24_p2, %s1347_s11, %s26_s22  }
  0x2c   : > { %p35_p8 = por %p34_p4, %p33_p1  ;;  %p1661_p10 = scmp.eq.s32.totalorder %s1411_s13, 1 }
  0x2d   : > { %s123_s18 = sand.u32 1, %s1347_s11   ;;  %s1031_s24 = sshll.u32 %s1351_s12, 7 }
  0x2e   : > { %p1481_p12 = por %p1661_p10, %p33_p1  ;;  %s1030_s25 = sshll.u32 %s123_s18, 3 }
  0x2f   : > { %s1490_s27 = scalar_lea.hbm %s1651_s0, %s1031_s24  ;;  %s127_s19 = scalar_lea.vmem [#allocation2], %s1030_s25 }
  0x30   : > { %s134_s22 = sshll.u32 %s127_s19, 4  ;;  %p1492_p11 = pnand %p1152_p6, %p35_p8  ;;  %s1496_s22 = int_to_ptr.vmem [resolvable:$true] %s134_s22 }
  0x31   : > { %s124_s28 = scalar_lea.sflag [#allocation3], %s123_s18  ;;  %s1251_s29 = scalar_lea.hbm %s1490_s27, 128 }
  0x32   : > { %p1252_p13 = scmp.ne.s32.totalorder %s1490_s27, %s1251_s29  ;;  %p1253_p0 = pneg %p1492_p11 }
  0x33   : > { %s1256_s4 = scalar_lea.hbm %s1651_s0, 256  ;;  %p1257_p7 = scmp.lt.u32.totalorder %s1490_s27, %s1651_s0 }
  0x34   : > { %p1254_p3 = pnand %p1253_p0, %p1252_p13  ;;  %p1258_p9 = scmp.lt.u32.totalorder %s1256_s4, %s1251_s29 }
  0x35   : > { %p1260_p1 = scmp.lt.u32.totalorder %s1251_s29, %s1490_s27 }
  0x36   : > { %p1255_p5 = pneg %p1254_p3  ;;  %p1259_p2 = por %p1258_p9, %p1257_p7 }
  0x38   : > { %p1261_p4 = por %p1260_p1, %p1259_p2 }
  0x3a   : > { %p1262_p6 = pnand %p1261_p4, %p1255_p5 }
  0x3c   : > { %1265 = shalt.err (!%p1262_p6)
}
  0x3d   : > { %s1266_s7 = scalar_lea.vmem %s1496_s22, 128  ;;  %s1356_s18 = smov [#allocation2]  }
  0x3e   : > { %p1267_p8 = scmp.ne.s32.totalorder %s1496_s22, %s1266_s7  ;;  %s1271_s24 = sshll.u32 %s1356_s18, 4  ;;  %s1272_s24 = int_to_ptr.vmem [resolvable:$false] %s1271_s24 }
  0x3f   : > { %s1273_s25 = scalar_lea.vmem %s1272_s24, 256  ;;  %p1274_p3 = scmp.lt.s32.totalorder %s1496_s22, %s1272_s24 }
  0x40   : > { %p1269_p10 = pnand %p1267_p8, %p1253_p0  ;;  %p1275_p7 = scmp.lt.s32.totalorder %s1273_s25, %s1266_s7 }
  0x42   : > { %p1270_p13 = pneg %p1269_p10  ;;  %p1276_p9 = por %p1275_p7, %p1274_p3 }
  0x44   : > { %p1277_p2 = pnand %p1276_p9, %p1270_p13 }
  0x46   : > { %1280 = shalt.err (!%p1277_p2)
}
  0x47   : > { %1146 = dma.hbm_to_vmem [thread:$0]  (!%p1492_p11), %s1490_s27, 128, %s1496_s22, %s124_s28  }
  0x48   : > { %p1664_p5 = scmp.ne.s32.totalorder %s1659_s17, 0 }
  0x49   : > { %s1526_s20 = sand.u32 (!%p1664_p5), 1, %s1343_s10   ;;  %p1665_p0 = scmp.ne.s32.totalorder (!%p1664_p5), %s1657_s15, 0 }
  0x4a   : > { %143 = sbr.rel (%p1664_p5) target bundleno = 1349 (0x545), region = 28  ;;  %s1033_s26 = sshll.u32 (!%p1664_p5), %s1526_s20, 3 }
  0x4b   : > { %s146_s19 = scalar_lea.sflag (!%p1664_p5), [#allocation3], %s1526_s20  ;;  %s149_s29 = scalar_lea.vmem (!%p1664_p5), [#allocation2], %s1033_s26 }
  0x51   : > { %1326 = dma.done.wait (%p1665_p0), %s146_s19, 128  }
  0x52   : > { %1328 = vsyncadd (%p1665_p0), %s146_s19, 4294967168  ;;  %p1666_p11 = scmp.eq.s32.totalorder %s1411_s13, 0 }
  0x54   : > { %1330 = dma.done.wait (%p1666_p11), [#allocation6], 512   ;;  %p1667_p1 = pmov %p1666_p11 }
  0x55   : > { %v1357_v0 = vmov 0.0|0.0   ;;  %vm1358_vm0 = vmmov 0   ;;  %v1359_v1 = vmov 0.0   ;;  %v175_v2 = vld [vmem:[#allocation5] sm:$0xff]  ;;  %v176_v3 = vld [vmem:[#allocation5 + $0x8] sm:$0xff]  ;;  %v177_v4 = vld [vmem:[#allocation5 + $0x10] sm:$0xff] }
  0x56   : > { %1332 = vsyncadd (%p1667_p1), [#allocation6], 4294966784  ;;  %1125 = vmatprep.subr.bf16.mxu0 %v1357_v0  ;;  %1082 = vmatprep.mubr.msk.f32.mxu0 %vm1358_vm0, %v1359_v1  ;;  %v1126_v5 = vpack.c.bf16 %v176_v3, %v175_v2  ;;  %v178_v6 = vld [vmem:[#allocation5 + $0x18] sm:$0xff]  ;;  %vm179_vm1 = vcmask 261120   ;;  %s1360_s15 = smov 120   ;;  %s1361_s17 = smov 96  }
  0x57   : > { %1085 = vmatprep.subr.mxu1 %v1359_v1  ;;  %1087 = vmatprep.mubr.msk.f32.mxu1 %vm1358_vm0, %v1359_v1  ;;  %v1129_v7 = vpack.c.bf16 %v178_v6, %v177_v4  ;;  %v174_v8 = vld [vmem:[%s149_s29] sm:$0xff]  ;;  %s1362_s27 = smov 80   ;;  %s1363_s22 = smov 88   ;;  %vm256_vm2 = vcmask 64512   ;;  %vm588_vm3 = vcmask 130112   ;;  %vm759_vm4 = vcmask 195712  }
  0x58   : > { %1127 = vmatpush3.bf16.msra.mxu0 %v1126_v5  ;;  %s1364_s23 = smov 72   ;;  %s1365_s28 = smov 112   ;;  %vm930_vm5 = vcmask 261312  }
  0x59   : > { %1128 = vmatprep.subr.bf16.mxu0 %v1357_v0  ;;  %s1366_s30 = smov 104   ;;  %s1367_s3 = smov 56  }
  0x5a   : > { %s1368_s4 = smov 64   ;;  %s1369_s5 = smov 48  }
  0x5b   : > { %s1370_s6 = smov 40   ;;  %s173_s7 = scalar_lea.vmem [#allocation7], %s1033_s26 }
  0x5c   : > { %1130 = vmatpush3.bf16.msra.mxu0 %v1129_v7  ;;  %s1371_s18 = smov 8   ;;  %s1372_s24 = smov 16  }
  0x5d   : > { %1095 = vmatprep.subr.mxu0 %v1359_v1  ;;  %s1373_s25 = smov 24   ;;  %s1050_s26 = sshll.u32 %s1411_s13, 7 }
  0x5e   : > { %s946_s19 = sshll.u32 %s173_s7, 4  ;;  %s1374_s13 = smov [#allocation7]   ;;  %s1609_s19 = int_to_ptr.vmem [resolvable:$true] %s946_s19 }
  0x5f   : > { %1083 = vmatmul.mubr.msk.f32.vlgmr.msra.gmra.mrb[0].mxu0 %vm179_vm1, %v174_v8 }
  0x60   : > { %1097 = vmatprep.mubr.msk.f32.mxu0 %vm1358_vm0, %v1359_v1 }
 0x132   : > { %v1548_v9 = vpop.f32.mrb[0].mxu0 }
 0x133   : > { %419 = vrot.lane.b32.xlu1 %v1548_v9, %s1360_s15  ;;  %254 = vrot.lane.b32.xlu0 %v1548_v9, %s1361_s17  ;;  %v1084_v10 = vpop.f32.mrb[1].mxu0  ;;  %s1607_s17 = scalar_lea.hbm %s1653_s2, %s1050_s26 }
 0x137   : > { %592 = vrot.lane.b32.xlu1 %v1548_v9, %s1362_s27  ;;  %421 = vrot.lane.b32.xlu0 %v1548_v9, %s1363_s22  ;;  %s933_s27 = scalar_lea.sflag [#allocation4], %s1526_s20  ;;  %s1281_s22 = scalar_lea.vmem %s1609_s19, 128 }
 0x138   : > { %p1282_p4 = scmp.ne.s32.totalorder %s1609_s19, %s1281_s22 }
 0x13a   : > { %p1283_p6 = pnand %p1282_p4, %p1481_p12 }
 0x13b   : > { %763 = vrot.lane.b32.xlu1 %v1548_v9, %s1364_s23  ;;  %590 = vrot.lane.b32.xlu0 %v1548_v9, %s1365_s28  ;;  %s1285_s23 = sshll.u32 %s1374_s13, 4  ;;  %s1286_s23 = int_to_ptr.vmem [resolvable:$false] %s1285_s23 }
 0x13c   : > { %p1284_p8 = pneg %p1283_p6  ;;  %s1287_s28 = scalar_lea.vmem %s1286_s23, 256 }
 0x13d   : > { %p1288_p10 = scmp.lt.s32.totalorder %s1609_s19, %s1286_s23  ;;  %p1289_p13 = scmp.lt.s32.totalorder %s1287_s28, %s1281_s22 }
 0x13f   : > { %761 = vrot.lane.b32.xlu0 %v1548_v9, %s1366_s30  ;;  %p1290_p3 = por %p1289_p13, %p1288_p10 }
 0x141   : > { %p1291_p7 = pnand %p1290_p3, %p1284_p8 }
 0x1a5   : > { %v420_v11 = vpop.permute.xlu1 %419  ;;  %v255_v12 = vpop.permute.xlu0 %254 }
 0x1a6   : > { %1086 = vmatpush3.xpose.msk.msra.mxu1 %vm256_vm2, %v255_v12 }
 0x1a7   : > { %1090 = vmatprep.subr.mxu1 %v1359_v1 }
 0x1a9   : > { %1088 = vmatmul.mubr.msk.f32.vlgmr.msra.gmra.mrb[0].mxu1 %vm256_vm2, %v1548_v9  ;;  %v422_v13 = vpop.permute.xlu0 %421  ;;  %v593_v14 = vpop.permute.xlu1 %592 }
 0x1aa   : > { %1096 = vmatpush3.xpose.msk.msra.mxu0 %vm256_vm2, %v422_v13  ;;  %1092 = vmatprep.mubr.msk.f32.mxu1 %vm1358_vm0, %v1359_v1 }
 0x1ab   : > { %1105 = vmatprep.subr.mxu0 %v1359_v1 }
 0x1ad   : > { %1098 = vmatmul.mubr.msk.f32.vlgmr.msra.gmra.mrb[2].mxu0 %vm256_vm2, %v420_v11  ;;  %v591_v15 = vpop.permute.xlu0 %590  ;;  %v764_v16 = vpop.permute.xlu1 %763 }
 0x1ae   : > { %1106 = vmatpush3.xpose.msk.msra.mxu0 %vm256_vm2, %v593_v14  ;;  %1107 = vmatprep.mubr.msk.f32.mxu0 %vm1358_vm0, %v1359_v1 }
 0x1af   : > { %1115 = vmatprep.subr.mxu0 %v1359_v1 }
 0x1b1   : > { %1108 = vmatmul.mubr.msk.f32.vlgmr.msra.gmra.mrb[4].mxu0 %vm256_vm2, %v591_v15  ;;  %v762_v17 = vpop.permute.xlu0 %761 }
 0x1b2   : > { %1116 = vmatpush3.xpose.msk.msra.mxu0 %vm256_vm2, %v764_v16  ;;  %1117 = vmatprep.mubr.msk.f32.mxu0 %vm1358_vm0, %v1359_v1 }
 0x1b5   : > { %1118 = vmatmul.mubr.msk.f32.vlgmr.msra.gmra.mrb[6].mxu0 %vm256_vm2, %v762_v17 }
 0x27c   : > { %v327_v18 = vpop.f32.mrb[0].mxu1 }
 0x27d   : > { %v1089_v19 = vpop.f32.mrb[1].mxu1  ;;  %v331_v20 = vsel %vm256_vm2, %v327_v18, -inf }
 0x27e   : > { %332 = vmax.xlane.f32.xlu1 %v331_v20 }
 0x280   : > { %v493_v21 = vpop.f32.mrb[2].mxu0 }
 0x281   : > { %v1099_v22 = vpop.f32.mrb[3].mxu0  ;;  %v497_v23 = vsel %vm256_vm2, %v493_v21, -inf }
 0x282   : > { %498 = vmax.xlane.f32.xlu0 %v497_v23 }
 0x284   : > { %v664_v24 = vpop.f32.mrb[4].mxu0 }
 0x285   : > { %v1109_v25 = vpop.f32.mrb[5].mxu0  ;;  %v668_v26 = vsel %vm256_vm2, %v664_v24, -inf }
 0x286   : > { %669 = vmax.xlane.f32.xlu0 %v668_v26 }
 0x288   : > { %v835_v27 = vpop.f32.mrb[6].mxu0 }
 0x289   : > { %v1119_v28 = vpop.f32.mrb[7].mxu0  ;;  %v839_v29 = vsel %vm256_vm2, %v835_v27, -inf }
 0x28a   : > { %840 = vmax.xlane.f32.xlu1 %v839_v29 }
 0x29b   : > { %508 = vrot.lane.b32.xlu1 %v1548_v9, %s1367_s3 }
 0x30b   : > { %v333_v30 = vpop.xlane.xlu1 %332 }
 0x30c   : > { %v334_v31 = vsub.f32 %v327_v18, %v333_v30 }
 0x30e   : > { %v335_v32 = vmul.f32 1.442695, %v334_v31 }
 0x30f   : > { %v499_v33 = vpop.xlane.xlu0 %498 }
 0x310   : > { %1207 = vpow2.f32 %v335_v32  ;;  %v500_v34 = vsub.f32 %v493_v21, %v499_v33 }
 0x312   : > { %v501_v35 = vmul.f32 1.442695, %v500_v34 }
 0x313   : > { %v670_v45 = vpop.xlane.xlu0 %669 }
 0x314   : > { %1209 = vpow2.f32 %v501_v35  ;;  %v671_v46 = vsub.f32 %v664_v24, %v670_v45 }
 0x316   : > { %v672_v47 = vmul.f32 1.442695, %v671_v46 }
 0x317   : > { %v841_v36 = vpop.xlane.xlu1 %840 }
 0x318   : > { %v842_v37 = vsub.f32 %v835_v27, %v841_v36 }
 0x31a   : > { %v1208_v38 = vpop.eup %1207  ;;  %v843_v39 = vmul.f32 1.442695, %v842_v37 }
 0x31b   : > { %v337_v40 = vsel %vm256_vm2, %v1208_v38, 0.0  ;;  %v509_v50 = vpop.permute.xlu1 %508 }
 0x31c   : > { %1211 = vpow2.f32 %v843_v39  ;;  %338 = vadd.xlane.f32.xlu0 %v337_v40 }
 0x31d   : > { %1213 = vpow2.f32 %v672_v47 }
 0x31e   : > { %v1210_v41 = vpop.eup %1209 }
 0x31f   : > { %v503_v42 = vsel %vm256_vm2, %v1210_v41, 0.0 }
 0x320   : > { %504 = vadd.xlane.f32.xlu1 %v503_v42 }
 0x326   : > { %v1212_v43 = vpop.eup %1211 }
 0x327   : > { %v845_v44 = vsel %vm256_vm2, %v1212_v43, 0.0  ;;  %v1214_v48 = vpop.eup %1213 }
 0x328   : > { %846 = vadd.xlane.f32.xlu1 %v845_v44  ;;  %v674_v49 = vsel %vm256_vm2, %v1214_v48, 0.0 }
 0x332   : > { %342 = vrot.lane.b32.xlu0 %v1548_v9, %s1368_s4 }
 0x339   : > { %679 = vrot.lane.b32.xlu1 %v1548_v9, %s1369_s5 }
 0x351   : > { %675 = vadd.xlane.f32.xlu0 %v674_v49 }
 0x367   : > { %850 = vrot.lane.b32.xlu0 %v1548_v9, %s1370_s6 }
 0x3a9   : > { %v339_v51 = vpop.xlane.xlu0 %338 }
 0x3aa   : > { %1215 = vrcp.f32 %v339_v51 }
 0x3ad   : > { %v343_v52 = vpop.permute.xlu0 %342  ;;  %v505_v53 = vpop.xlane.xlu1 %504 }
 0x3ae   : > { %1217 = vrcp.f32 %v505_v53  ;;  %1091 = vmatpush3.msra.mxu1 %v343_v52 }
 0x3af   : > { %1100 = vmatprep.subr.mxu1 %v1359_v1 }
 0x3b4   : > { %v1216_v54 = vpop.eup %1215 }
 0x3b5   : > { %v341_v55 = vmul.f32 %v1216_v54, %v1208_v38  ;;  %v847_v56 = vpop.xlane.xlu1 %846 }
 0x3b7   : > { %1093 = vmatmul.mubr.msk.f32.vlgmr.msra.gmra.mrb[2].mxu1 %vm256_vm2, %v341_v55 }
 0x3b8   : > { %v1218_v57 = vpop.eup %1217  ;;  %1101 = vmatpush3.msra.mxu1 %v509_v50  ;;  %1102 = vmatprep.mubr.msk.f32.mxu1 %vm1358_vm0, %v1359_v1 }
 0x3b9   : > { %v507_v58 = vmul.f32 %v1218_v57, %v1210_v41  ;;  %v680_v59 = vpop.permute.xlu1 %679  ;;  %1110 = vmatprep.subr.mxu1 %v1359_v1 }
 0x3bb   : > { %1103 = vmatmul.mubr.msk.f32.vlgmr.msra.gmra.mrb[4].mxu1 %vm256_vm2, %v507_v58 }
 0x3bc   : > { %1111 = vmatpush3.msra.mxu1 %v680_v59  ;;  %1112 = vmatprep.mubr.msk.f32.mxu1 %vm1358_vm0, %v1359_v1 }
 0x3bd   : > { %1120 = vmatprep.subr.mxu1 %v1359_v1 }
 0x3de   : > { %v676_v60 = vpop.xlane.xlu0 %675 }
 0x3df   : > { %1219 = vrcp.f32 %v676_v60 }
 0x3e0   : > { %1221 = vrcp.f32 %v847_v56 }
 0x3e2   : > { %v851_v0 = vpop.permute.xlu0 %850 }
 0x3e9   : > { %v1220_v61 = vpop.eup %1219 }
 0x3ea   : > { %v678_v62 = vmul.f32 %v1220_v61, %v1214_v48  ;;  %v1222_v63 = vpop.eup %1221 }
 0x3eb   : > { %v849_v2 = vmul.f32 %v1222_v63, %v1212_v43 }
 0x3ec   : > { %1113 = vmatmul.mubr.msk.f32.vlgmr.msra.gmra.mrb[6].mxu1 %vm256_vm2, %v678_v62 }
 0x3ed   : > { %1121 = vmatpush3.msra.mxu1 %v851_v0  ;;  %1122 = vmatprep.mubr.msk.f32.mxu1 %vm1358_vm0, %v1359_v1 }
 0x3f0   : > { %1123 = vmatmul.mubr.msk.f32.vlgmr.msra.gmra.mrb[8].mxu1 %vm256_vm2, %v849_v2 }
 0x48a   : > { %v414_v3 = vpop.f32.mrb[2].mxu1 }
 0x48b   : > { %418 = vst.msk [vmem:[%s173_s7] sm:$0xff] %vm256_vm2, %v414_v3  ;;  %v1094_v4 = vpop.f32.mrb[3].mxu1 }
 0x48e   : > { %v580_v5 = vpop.f32.mrb[4].mxu1 }
 0x48f   : > { %585 = vrot.lane.b32.xlu1 %v580_v5, %s1371_s18  ;;  %v1104_v6 = vpop.f32.mrb[5].mxu1 }
 0x4bf   : > { %v751_v7 = vpop.f32.mrb[6].mxu1 }
 0x4c0   : > { %756 = vrot.lane.b32.xlu0 %v751_v7, %s1372_s24  ;;  %v1114_v8 = vpop.f32.mrb[7].mxu1 }
 0x4c3   : > { %v922_v9 = vpop.f32.mrb[8].mxu1 }
 0x4c4   : > { %927 = vrot.lane.b32.xlu1 %v922_v9, %s1373_s25  ;;  %v1124_v1 = vpop.f32.mrb[9].mxu1 }
 0x501   : > { %v586_v10 = vpop.permute.xlu1 %585 }
 0x502   : > { %589 = vst.msk [vmem:[%s173_s7] sm:$0xff] %vm588_vm3, %v586_v10 }
 0x532   : > { %v757_v11 = vpop.permute.xlu0 %756 }
 0x533   : > { %760 = vst.msk [vmem:[%s173_s7] sm:$0xff] %vm759_vm4, %v757_v11 }
 0x536   : > { %v928_v12 = vpop.permute.xlu1 %927 }
 0x537   : > { %931 = vst.msk [vmem:[%s173_s7] sm:$0xff] %vm930_vm5, %v928_v12 }
 0x538   : > { %1294 = shalt.err (!%p1291_p7)
}
 0x539   : > { %s1295_s20 = scalar_lea.hbm %s1607_s17, 128  ;;  %s1299_s4 = scalar_lea.hbm %s1653_s2, 256 }
 0x53a   : > { %p1296_p9 = scmp.ne.s32.totalorder %s1607_s17, %s1295_s20  ;;  %p1300_p0 = scmp.lt.u32.totalorder %s1607_s17, %s1653_s2 }
 0x53b   : > { %p1301_p11 = scmp.lt.u32.totalorder %s1299_s4, %s1295_s20  ;;  %p1303_p4 = scmp.lt.u32.totalorder %s1295_s20, %s1607_s17 }
 0x53c   : > { %p1297_p2 = pnand %p1296_p9, %p1481_p12 }
 0x53d   : > { %p1302_p1 = por %p1301_p11, %p1300_p0 }
 0x53e   : > { %p1298_p5 = pneg %p1297_p2 }
 0x53f   : > { %p1304_p6 = por %p1303_p4, %p1302_p1 }
 0x541   : > { %p1305_p8 = pnand %p1304_p6, %p1298_p5 }
 0x543   : > { %1308 = shalt.err (!%p1305_p8)
}
 0x544   : > { %1137 = dma.vmem_to_hbm [thread:$0]  (%p1481_p12), %s1609_s19, 128, %s1607_s17, %s933_s27  }
 0x545 PF: > { %s958_s7 = sand.u32 1, %s1339_s9   ;;  %p1668_p10 = scmp.ne.s32.totalorder %s1658_s16, 0 }
 0x546   : > { %p1669_p13 = scmp.ge.s32.totalorder %s1351_s12, 2  ;;  %s959_s18 = scalar_lea.sflag [#allocation4], %s958_s7 }
 0x548   : > { %p1148_p3 = pnand %p1669_p13, %p1668_p10 }
 0x54a   : > { %1334 = dma.done.wait (!%p1148_p3), %s959_s18, 128  }
 0x54b   : > { %1336 = vsyncadd (!%p1148_p3), %s959_s18, 4294967168  ;;  %p16_p7 = scmp.ge.s32.totalorder %s1446_s21, 4   ;;  %s1670_s9 = smov %s1343_s10 }
 0x54c   : > { %s1671_s10 = smov %s1347_s11  ;;  %s1672_s11 = smov %s1477_s8 }
 0x54d   : > { %s1673_s12 = smov %s1446_s21  ;;  %18 = sbr.rel (!%p16_p7) target bundleno = 6 (0x6), region = 77 }
 0x554   :  { %964 = vsyncpa [#allocation3], 1 }
 0x555   :  { %966 = vsyncpa [#allocation3 + $0x1], 1 }
 0x556   :  { %967 = vsyncpa [#allocation6], 1 }
 0x557   :  { %968 = vsyncpa [#allocation4], 1 }
 0x558   :  { %970 = vsyncpa [#allocation4 + $0x1], 1 }

</bundles_post_ra>
